<compile_context>
chip_gen: v6e
topology: v6e:2x2x1
jax: 0.10.0
libtpu: 0.0.40
codegen_flags: <defaults>
</compile_context>

<pallas_src>
import functools

import jax
import jax.numpy as jnp
from jax.experimental import pallas as pl
from jax.experimental.pallas import tpu as pltpu


def _round_up(x: int, m: int) -> int:
    return (x + m - 1) // m * m


def _w8a16_kernel(x_ref, w_ref, scales_ref, bias_ref, o_ref, acc_ref):
    """One (tm, tn) output tile, accumulated over the K grid axis.

    x_ref:      (tm, tk)  bf16 activations
    w_ref:      (tk, tn)  int8 weights (stored K-major / pre-transposed)
    scales_ref: (1, tn)   f32 per-output-channel scales
    bias_ref:   (1, tn)   f32 bias
    o_ref:      (tm, tn)  output tile
    acc_ref:    (tm, tn)  f32 accumulator scratch
    """
    k = pl.program_id(2)

    @pl.when(k == 0)
    def _():
        acc_ref[...] = jnp.zeros_like(acc_ref)

    # Dequantize on the fly: int8 values are exactly representable in bf16,
    # so the MXU runs at the fast bf16 rate with exact products, f32 accumulation.
    x = x_ref[...]
    w = w_ref[...].astype(jnp.bfloat16)
    acc_ref[...] += jnp.dot(x, w, preferred_element_type=jnp.float32)

    # Scale + bias epilogue only once per output tile, after the K reduction.
    @pl.when(k == pl.num_programs(2) - 1)
    def _():
        out = acc_ref[...] * scales_ref[...] + bias_ref[...]
        o_ref[...] = out.astype(o_ref.dtype)


@functools.partial(jax.jit, static_argnames=("tm", "tn", "tk"))
def w8a16_linear(x, int8_weights, scales, bias=None, *, tm=256, tn=256, tk=512):
    """Pallas W8A16 linear.  x: (..., K); int8_weights: (N, K); returns (..., N)."""
    orig_shape = x.shape
    K = orig_shape[-1]
    N = int8_weights.shape[0]

    # TPU has no native fp16 compute path; compute/accumulate in f32 instead.
    out_dtype = jnp.float32 if x.dtype == jnp.float16 else x.dtype

    x2d = x.reshape(-1, K)
    M = x2d.shape[0]

    # Effective tile sizes: shrink to the (alignment-padded) problem size for small
    # shapes while keeping layout constraints (sublane multiple of 8, lane of 128).
    tm_e = min(tm, _round_up(M, 8))
    tn_e = min(tn, _round_up(N, 128))
    tk_e = min(tk, _round_up(K, 128))

    M_p = _round_up(M, tm_e)
    N_p = _round_up(N, tn_e)
    K_p = _round_up(K, tk_e)

    # bf16 activations -> fast MXU path (zero padding contributes nothing to the dot).
    x_p = jnp.zeros((M_p, K_p), jnp.bfloat16).at[:M, :K].set(x2d.astype(jnp.bfloat16))
    # One-time weight transpose to (K, N) int8: lane-dense weight DMAs, straight x @ w.
    w_t = jnp.zeros((K_p, N_p), jnp.int8).at[:K, :N].set(int8_weights.T)
    scales_p = jnp.zeros((1, N_p), jnp.float32).at[:, :N].set(
        scales.reshape(1, N).astype(jnp.float32))
    if bias is None:
        bias_p = jnp.zeros((1, N_p), jnp.float32)
    else:
        bias_p = jnp.zeros((1, N_p), jnp.float32).at[:, :N].set(
            bias.reshape(1, N).astype(jnp.float32))

    grid = (M_p // tm_e, N_p // tn_e, K_p // tk_e)

    out_p = pl.pallas_call(
        _w8a16_kernel,
        out_shape=jax.ShapeDtypeStruct((M_p, N_p), out_dtype),
        grid_spec=pltpu.PrefetchScalarGridSpec(
            num_scalar_prefetch=0,
            grid=grid,
            in_specs=[
                pl.BlockSpec((tm_e, tk_e), lambda i, j, k: (i, k)),   # activations
                pl.BlockSpec((tk_e, tn_e), lambda i, j, k: (k, j)),   # int8 weights (K,N)
                pl.BlockSpec((1, tn_e), lambda i, j, k: (0, j)),      # scales
                pl.BlockSpec((1, tn_e), lambda i, j, k: (0, j)),      # bias
            ],
            out_specs=pl.BlockSpec((tm_e, tn_e), lambda i, j, k: (i, j)),
            scratch_shapes=[pltpu.VMEM((tm_e, tn_e), jnp.float32)],
        ),
        compiler_params=pltpu.CompilerParams(
            dimension_semantics=("parallel", "parallel", "arbitrary"),
        ),
    )(x_p, w_t, scales_p, bias_p)

    out = out_p[:M, :N].astype(x.dtype if x.dtype != jnp.float16 else jnp.float16)
    return out.reshape(*orig_shape[:-1], N)


if __name__ == "__main__":
    # Shapes implied by the module: weights (out_features, in_features),
    # activations (batch, seq, in_features).
    batch, seq = 2, 8
    in_features, out_features = 32, 64

    key = jax.random.PRNGKey(0)
    k_x, k_w, k_s, k_b = jax.random.split(key, 4)

    x = jax.random.normal(k_x, (batch, seq, in_features), dtype=jnp.float32)
    int8_weights = jax.random.randint(
        k_w, (out_features, in_features), -128, 127, dtype=jnp.int8
    )
    scales = jax.random.normal(k_s, (out_features,), dtype=jnp.float32)
    bias = jax.random.normal(k_b, (1, out_features), dtype=jnp.float32)

    out = w8a16_linear(x, int8_weights, scales, bias)
    out = jax.block_until_ready(out)

    # Exact PyTorch-semantics reference (fp32 dequant).
    w_f32 = int8_weights.astype(jnp.float32)
    ref = (x @ w_f32.T) * scales + bias
    # Reference matching the kernel's bf16 activation rounding (weights exact in bf16).
    x_bf = x.astype(jnp.bfloat16).astype(jnp.float32)
    ref_bf = (x_bf @ w_f32.T) * scales + bias

    assert out.shape == (batch, seq, out_features)
    assert jnp.allclose(out, ref_bf, rtol=1e-2, atol=1e-2), "mismatch vs bf16 reference"
    rel_err = jnp.max(jnp.abs(out - ref)) / (jnp.max(jnp.abs(ref)) + 1e-6)
    assert rel_err < 2e-2, f"mismatch vs exact reference: rel_err={rel_err}"

    print("KERNEL_OK")
</pallas_src>

<mosaic_0001>
module attributes {stable_mosaic.version = 11 : i64} {
  func.func @_w8a16_kernel(%arg0: i32, %arg1: i32, %arg2: i32, %arg3: memref<16x128xbf16, #tpu.memory_space<vmem>>, %arg4: memref<128x128xi8, #tpu.memory_space<vmem>>, %arg5: memref<1x128xf32, #tpu.memory_space<vmem>>, %arg6: memref<1x128xf32, #tpu.memory_space<vmem>>, %arg7: memref<16x128xf32, #tpu.memory_space<vmem>>, %arg8: memref<16x128xf32, #tpu.memory_space<vmem>>) attributes {dimension_semantics = [#tpu.dimension_semantics<parallel>, #tpu.dimension_semantics<parallel>, #tpu.dimension_semantics<arbitrary>], iteration_bounds = array<i64: 1, 1, 1>, scalar_prefetch = 0 : i64, scratch_operands = 1 : i64, tpu.core_type = #tpu.core_type<tc>, window_params = [{transform_indices = @transform_0, window_bounds = array<i64: 16, 128>}, {transform_indices = @transform_1, window_bounds = array<i64: 128, 128>}, {transform_indices = @transform_2, window_bounds = array<i64: 1, 128>}, {transform_indices = @transform_3, window_bounds = array<i64: 1, 128>}, {transform_indices = @transform_4, window_bounds = array<i64: 16, 128>}]} {
    %c0_i32 = arith.constant 0 : i32
    %0 = arith.cmpi eq, %arg2, %c0_i32 : i32
    %1 = arith.extui %0 : i1 to i32
    %c0_i32_0 = arith.constant 0 : i32
    %2 = arith.cmpi ne, %1, %c0_i32_0 : i32
    scf.if %2 {
      %cst_10 = arith.constant 0.000000e+00 : f32
      %13 = vector.broadcast %cst_10 : f32 to vector<16x128xf32>
      %c0_11 = arith.constant 0 : index
      %c0_12 = arith.constant 0 : index
      %14 = vector.load %arg8[%c0_11, %c0_12] : memref<16x128xf32, #tpu.memory_space<vmem>>, vector<16x128xf32>
      tpu.vector_store %arg8[%c0_11, %c0_12], %13 {strides = array<i32>} : memref<16x128xf32, #tpu.memory_space<vmem>>, vector<16x128xf32>,
    } else {
    }
    %c0 = arith.constant 0 : index
    %c0_1 = arith.constant 0 : index
    %3 = vector.load %arg3[%c0, %c0_1] : memref<16x128xbf16, #tpu.memory_space<vmem>>, vector<16x128xbf16>
    %c0_2 = arith.constant 0 : index
    %c0_3 = arith.constant 0 : index
    %4 = vector.load %arg4[%c0_2, %c0_3] : memref<128x128xi8, #tpu.memory_space<vmem>>, vector<128x128xi8>
    %5 = arith.sitofp %4 : vector<128x128xi8> to vector<128x128xbf16>
    %c0_4 = arith.constant 0 : index
    %c0_5 = arith.constant 0 : index
    %6 = vector.load %arg8[%c0_4, %c0_5] : memref<16x128xf32, #tpu.memory_space<vmem>>, vector<16x128xf32>
    %cst = arith.constant dense<0.000000e+00> : vector<16x128xf32>
    %7 = tpu.matmul %3, %5, %cst {dimension_numbers = #tpu.dot_dimension_numbers<[1], [0], [0], [1], [0, 0, 1, 1], [], []>} : vector<16x128xbf16>, vector<128x128xbf16>, vector<16x128xf32> -> vector<16x128xf32>
    %8 = arith.addf %6, %7 : vector<16x128xf32>
    %c0_6 = arith.constant 0 : index
    %c0_7 = arith.constant 0 : index
    %9 = vector.load %arg8[%c0_6, %c0_7] : memref<16x128xf32, #tpu.memory_space<vmem>>, vector<16x128xf32>
    tpu.vector_store %arg8[%c0_6, %c0_7], %8 {strides = array<i32>} : memref<16x128xf32, #tpu.memory_space<vmem>>, vector<16x128xf32>,
    %c0_i32_8 = arith.constant 0 : i32
    %10 = arith.cmpi eq, %arg2, %c0_i32_8 : i32
    %11 = arith.extui %10 : i1 to i32
    %c0_i32_9 = arith.constant 0 : i32
    %12 = arith.cmpi ne, %11, %c0_i32_9 : i32
    scf.if %12 {
      %c0_10 = arith.constant 0 : index
      %c0_11 = arith.constant 0 : index
      %13 = vector.load %arg8[%c0_10, %c0_11] : memref<16x128xf32, #tpu.memory_space<vmem>>, vector<16x128xf32>
      %c0_12 = arith.constant 0 : index
      %c0_13 = arith.constant 0 : index
      %14 = vector.load %arg5[%c0_12, %c0_13] : memref<1x128xf32, #tpu.memory_space<vmem>>, vector<1x128xf32>
      %15 = vector.broadcast %14 : vector<1x128xf32> to vector<16x128xf32>
      %16 = arith.mulf %13, %15 : vector<16x128xf32>
      %c0_14 = arith.constant 0 : index
      %c0_15 = arith.constant 0 : index
      %17 = vector.load %arg6[%c0_14, %c0_15] : memref<1x128xf32, #tpu.memory_space<vmem>>, vector<1x128xf32>
      %18 = vector.broadcast %17 : vector<1x128xf32> to vector<16x128xf32>
      %19 = arith.addf %16, %18 : vector<16x128xf32>
      %c0_16 = arith.constant 0 : index
      %c0_17 = arith.constant 0 : index
      %20 = vector.load %arg7[%c0_16, %c0_17] : memref<16x128xf32, #tpu.memory_space<vmem>>, vector<16x128xf32>
      tpu.vector_store %arg7[%c0_16, %c0_17], %19 {strides = array<i32>} : memref<16x128xf32, #tpu.memory_space<vmem>>, vector<16x128xf32>,
    } else {
    }
    return
  }
  func.func @transform_0(%arg0: i32, %arg1: i32, %arg2: i32) -> (i32, i32) {
    %c0_i32 = arith.constant 0 : i32
    return %arg0, %arg2 : i32, i32
  }
  func.func @transform_1(%arg0: i32, %arg1: i32, %arg2: i32) -> (i32, i32) {
    %c0_i32 = arith.constant 0 : i32
    return %arg2, %arg1 : i32, i32
  }
  func.func @transform_2(%arg0: i32, %arg1: i32, %arg2: i32) -> (i32, i32) {
    %c0_i32 = arith.constant 0 : i32
    %c0_i32_0 = arith.constant 0 : i32
    return %c0_i32, %arg1 : i32, i32
  }
  func.func @transform_3(%arg0: i32, %arg1: i32, %arg2: i32) -> (i32, i32) {
    %c0_i32 = arith.constant 0 : i32
    %c0_i32_0 = arith.constant 0 : i32
    return %c0_i32, %arg1 : i32, i32
  }
  func.func @transform_4(%arg0: i32, %arg1: i32, %arg2: i32) -> (i32, i32) {
    %c0_i32 = arith.constant 0 : i32
    return %arg0, %arg1 : i32, i32
  }
}

</mosaic_0001>

<bundles_post_ra>
// kernel: w8a16_linear.1
= control target key start
LH: loop header
LB: loop body
LE: loop exit
PB: predicated region body
PF: predicated region fallthrough
CT: control target
= control target key end

     0   :  { %v155_v0 = vmov 0.0   ;;  %vm156_vm0 = vmmov 0   ;;  %s209_s1 = inlined_call_operand.vmem [shape: s8[128,128], index: 1, kind: input, shape index: {}]   ;;  %s210_s0 = inlined_call_operand.vmem [shape: bf16[16,128], index: 0, kind: input, shape index: {}]   ;;  %s211_s2 = inlined_call_operand.vmem [shape: f32[1,128], index: 2, kind: input, shape index: {}]   ;;  %s212_s3 = inlined_call_operand.vmem [shape: f32[1,128], index: 3, kind: input, shape index: {}]   ;;  %s213_s4 = inlined_call_operand.vmem [shape: f32[16,128], index: 4, kind: output, shape index: {}]  }
   0x1   :  { %132 = vmatprep.subr.bf16.mxu0 %v155_v0  ;;  %v29_v1 = vld [vmem:[%s209_s1 + $0x18] sm:$0xff]  ;;  %148 = vmatprep.mubr.msk.bf16.mxu0 %vm156_vm0, %v155_v0  ;;  %v28_v4 = vld [vmem:[%s209_s1 + $0x10] sm:$0xff]  ;;  %v27_v7 = vld [vmem:[%s209_s1 + $0x8] sm:$0xff] }
   0x2   :  { %v37_v2 = vunpack.c.h.s8.bf16 %v29_v1  ;;  %v36_v3 = vunpack.c.l.s8.bf16 %v29_v1  ;;  %v35_v5 = vunpack.c.h.s8.bf16 %v28_v4  ;;  %v34_v6 = vunpack.c.l.s8.bf16 %v28_v4  ;;  %v26_v10 = vld [vmem:[%s209_s1] sm:$0xff] }
   0x3   :  { %v33_v8 = vunpack.c.h.s8.bf16 %v27_v7  ;;  %v32_v9 = vunpack.c.l.s8.bf16 %v27_v7  ;;  %v31_v11 = vunpack.c.h.s8.bf16 %v26_v10  ;;  %v30_v12 = vunpack.c.l.s8.bf16 %v26_v10  ;;  %v154_v13 = vld [vmem:[%s210_s0] sm:$0xff]  }
   0x4   :  { %133 = vmatpush3.bf16.msra.mxu0 %v37_v2  ;;  %v121_v14 = vld [vmem:[%s211_s2] ss:$0 sm:$0xff] }
   0x5   :  { %134 = vmatprep.subr.bf16.mxu0 %v155_v0  ;;  %v122_v16 = vld [vmem:[%s212_s3] ss:$0 sm:$0xff] }
   0x8   :  { %135 = vmatpush3.bf16.msra.mxu0 %v36_v3 }
   0x9   :  { %136 = vmatprep.subr.bf16.mxu0 %v155_v0 }
   0xc   :  { %137 = vmatpush3.bf16.msra.mxu0 %v35_v5 }
   0xd   :  { %138 = vmatprep.subr.bf16.mxu0 %v155_v0 }
  0x10   :  { %139 = vmatpush3.bf16.msra.mxu0 %v34_v6 }
  0x11   :  { %140 = vmatprep.subr.bf16.mxu0 %v155_v0 }
  0x14   :  { %141 = vmatpush3.bf16.msra.mxu0 %v33_v8 }
  0x15   :  { %142 = vmatprep.subr.bf16.mxu0 %v155_v0 }
  0x18   :  { %143 = vmatpush3.bf16.msra.mxu0 %v32_v9 }
  0x19   :  { %144 = vmatprep.subr.bf16.mxu0 %v155_v0 }
  0x1c   :  { %145 = vmatpush3.bf16.msra.mxu0 %v31_v11 }
  0x1d   :  { %146 = vmatprep.subr.bf16.mxu0 %v155_v0 }
  0x20   :  { %147 = vmatpush3.bf16.msra.mxu0 %v30_v12 }
  0x23   :  { %149 = vmatmul.mubr.bf16.vlgmr.msra.gmra.mxu0 %v154_v13 }
  0xe3   :  { %v80_v15 = vpop.f32.mrf.mxu0 }
  0xe4   :  { %v103_v17 = vmul.f32 %v121_v14, %v80_v15 }
  0xe5   :  { %v150_v18 = vpop.f32.mrf.mxu0 }
  0xe6   :  { %v112_v19 = vadd.f32 %v122_v16, %v103_v17 }
  0xe7   :  { %v83_v20 = vpop.f32.mrf.mxu0 }
  0xe8   :  { %114 = vst [vmem:[%s213_s4] sm:$0xff] %v112_v19  ;;  %v104_v21 = vmul.f32 %v121_v14, %v83_v20 }
  0xe9   :  { %v151_v22 = vpop.f32.mrf.mxu0 }
  0xea   :  { %v113_v23 = vadd.f32 %v122_v16, %v104_v21 }
  0xec   :  { %115 = vst [vmem:[%s213_s4 + $0x8] sm:$0xff] %v113_v23 }

</bundles_post_ra>
